<compile_context>
chip_gen: v5e
topology: v5e:2x2
jax: 0.10.0
libtpu: 0.0.40
codegen_flags: <defaults>
</compile_context>

<pallas_src>
import numpy as np
import jax
import jax.numpy as jnp
from jax.experimental import pallas as pl
from jax.experimental.pallas import tpu as pltpu

N_NODES = 8        # graph nodes       (n_features[0])
N_FEATS = 4        # per-node features (n_features[1])
HIDDEN = 32        # GCN hidden width
VALUE_HIDDEN = 512
BATCH = 2
OUT_ROWS = 8       # padded output rows (full sublane tile -> unmasked store)
OUT_LANES = 128    # lane-dense output width (column 0 carries the value)


def _ru8(r):
    return ((r + 7) // 8) * 8


# ---- packed-parameter layouts (shared by prep + kernel; all offsets 8-row aligned
#      where it matters, so every ref slice starts on a sublane-tile boundary) ----
BN = BATCH * N_NODES                 # 16 rows of block-diagonal adjacency
SP_OFF_A = 0
SP_OFF_W1 = _ru8(BN)                 # 16
SP_OFF_W2 = SP_OFF_W1 + _ru8(N_FEATS)        # 24
SP_OFF_B1 = SP_OFF_W2 + HIDDEN               # 56
SP_OFF_B2 = SP_OFF_B1 + 1                    # 57
SP_ROWS = _ru8(SP_OFF_B2 + 1)                # 64
SP_LANES = HIDDEN                            # 32 (a_big needs BN<=HIDDEN lanes)

WP_OFF_WV1 = 0
WP_OFF_BV1 = N_NODES * HIDDEN                # 256
WP_OFF_WV2 = WP_OFF_BV1 + 1                  # 257
WP_OFF_BV2 = WP_OFF_WV2 + 1                  # 258
WP_ROWS = _ru8(WP_OFF_BV2 + 1)               # 264
WP_LANES = VALUE_HIDDEN                      # 512


def critic_kernel(x_ref, sp_ref, wp_ref, o_ref, flat_ref):
    """Fused ModelCritic forward, whole batch, single invocation (no grid).

    Layouts (all resident in VMEM):
      x_ref   : (B*N, F)        batch-major node rows, row index = b*N + n
      sp_ref  : (SP_ROWS, H)    packed: kron(I_B, A_norm), W1, W2, b1, b2
      wp_ref  : (WP_ROWS, V)    packed: Wv1 (native [in,out]), bv1, Wv2^T row, bv2
      o_ref   : (8, 128)        lane-dense padded output; [b, 0] = critic value for b < B
      flat_ref: (8, N*H)        VMEM scratch holding the flattened GCN output
    """
    B, N, F, H = BATCH, N_NODES, N_FEATS, HIDDEN

    # -- unpack small params (static ref slices) --
    a = sp_ref[SP_OFF_A:SP_OFF_A + BN, 0:BN]            # (BN, BN) block-diag norm. adjacency
    w1 = sp_ref[SP_OFF_W1:SP_OFF_W1 + F, 0:H]           # (F, H)
    w2 = sp_ref[SP_OFF_W2:SP_OFF_W2 + H, 0:H]           # (H, H)
    b1 = sp_ref[SP_OFF_B1:SP_OFF_B1 + 1, 0:H]           # (1, H)
    b2 = sp_ref[SP_OFF_B2:SP_OFF_B2 + 1, 0:H]           # (1, H)

    x = x_ref[...]                                       # (BN, F)

    # -- GCN layer 1: tanh((A @ X) @ W1 + b1)   (reassociated: smaller intermediate) --
    ax = jnp.dot(a, x, preferred_element_type=jnp.float32)                  # (BN, F)
    h = jnp.tanh(jnp.dot(ax, w1, preferred_element_type=jnp.float32) + b1)  # (BN, H)

    # -- GCN layer 2: tanh((A @ H1) @ W2 + b2) --
    ah = jnp.dot(a, h, preferred_element_type=jnp.float32)                  # (BN, H)
    h = jnp.tanh(jnp.dot(ah, w2, preferred_element_type=jnp.float32) + b2)  # (BN, H)

    # -- Flatten (B*N, H) -> (B, N*H), padded to 8 rows, via tiny static scratch stores
    #    (avoids a lane-crossing in-kernel reshape; pad rows make the value-head matmul
    #     and the final store fully unmasked). 16 sub-vreg stores total -> negligible. --
    flat_ref[...] = jnp.zeros_like(flat_ref)
    for b in range(B):                      # static, fully unrolled
        for n in range(N):
            flat_ref[b:b + 1, n * H:(n + 1) * H] = h[b * N + n:b * N + n + 1, :]
    flat = flat_ref[...]                                                     # (8, N*H)

    # -- Value head layer 1: ONE MXU matmul (8, 256) @ (256, 512) --
    wv1 = wp_ref[WP_OFF_WV1:WP_OFF_WV1 + N * H, :]       # (N*H, V)
    bv1 = wp_ref[WP_OFF_BV1:WP_OFF_BV1 + 1, :]           # (1, V)
    wv2 = wp_ref[WP_OFF_WV2:WP_OFF_WV2 + 1, :]           # (1, V)  (Wv2 as a row)
    bv2 = wp_ref[WP_OFF_BV2:WP_OFF_BV2 + 1, 0:1]         # (1, 1)
    z1 = jnp.tanh(jnp.dot(flat, wv1, preferred_element_type=jnp.float32) + bv1)  # (8, V)

    # -- Value head layer 2: (8,512)@(512,1) as a VPU/XLU lane reduction --
    z2 = jnp.tanh(jnp.sum(z1 * wv2, axis=-1, keepdims=True) + bv2)                # (8, 1)

    # Lane-dense, fully unmasked store; wrapper keeps [:B, :1].
    o_ref[...] = jnp.broadcast_to(z2, o_ref.shape)


def gcn_norm_adj(edge_index, n_nodes):
    """Symmetric GCN normalization: D^-1/2 (A + I) D^-1/2 with A[dst, src] = 1.
    NOTE: repeated edges are deduplicated (the ring graph used here has none)."""
    src, dst = edge_index
    a = np.zeros((n_nodes, n_nodes), dtype=np.float32)
    a[dst, src] = 1.0
    a = a + np.eye(n_nodes, dtype=np.float32)
    deg = a.sum(axis=1)
    dinv = 1.0 / np.sqrt(np.maximum(deg, 1e-12))
    return np.asarray(a * dinv[:, None] * dinv[None, :], dtype=np.float32)


def prepare_critic_params(params, anorm_np, batch):
    """One-time host-side packing of ALL parameters into two VMEM-friendly buffers
    (hoisted out of the per-call path)."""
    N, F, H, V = N_NODES, N_FEATS, HIDDEN, VALUE_HIDDEN
    assert batch * N == BN and BN <= SP_LANES, "adjacency must fit in the small-param pack"

    # Batch-major block-diagonal normalized adjacency: kron(I_B, A_norm).
    a_big = np.kron(np.eye(batch, dtype=np.float32), anorm_np)          # (BN, BN)

    sp = np.zeros((SP_ROWS, SP_LANES), dtype=np.float32)
    sp[SP_OFF_A:SP_OFF_A + BN, 0:BN] = a_big
    sp[SP_OFF_W1:SP_OFF_W1 + F, :] = np.asarray(params["w1"])
    sp[SP_OFF_W2:SP_OFF_W2 + H, :] = np.asarray(params["w2"])
    sp[SP_OFF_B1, :] = np.asarray(params["b1"]).reshape(-1)
    sp[SP_OFF_B2, :] = np.asarray(params["b2"]).reshape(-1)

    wp = np.zeros((WP_ROWS, WP_LANES), dtype=np.float32)
    wp[WP_OFF_WV1:WP_OFF_WV1 + N * H, :] = np.asarray(params["wv1"])    # native [in,out]
    wp[WP_OFF_BV1, :] = np.asarray(params["bv1"]).reshape(-1)
    wp[WP_OFF_WV2, :] = np.asarray(params["wv2"]).reshape(-1)
    wp[WP_OFF_BV2, 0] = np.asarray(params["bv2"]).reshape(-1)[0]

    return jnp.asarray(sp), jnp.asarray(wp)


def model_critic_forward(features, spack, wpack):
    """Per-call path: free reshape -> single pallas_call -> slice."""
    B, N, F = features.shape
    H, V = HIDDEN, VALUE_HIDDEN
    nb = B * N
    x_flat = features.reshape(nb, F)     # batch-major rows (b*N + n); no data movement

    flops = 2 * (nb * nb * F + nb * F * H            # GCN layer 1
                 + nb * nb * H + nb * H * H          # GCN layer 2
                 + OUT_ROWS * (N * H) * V            # value layer 1 (padded rows)
                 + OUT_ROWS * V)                     # value layer 2 lane reduction
    transcendentals = 2 * nb * H + OUT_ROWS * V + OUT_ROWS
    bytes_accessed = 4 * (x_flat.size + spack.size + wpack.size + OUT_ROWS * OUT_LANES)

    vmem = pl.BlockSpec(memory_space=pltpu.MemorySpace.VMEM)
    out = pl.pallas_call(
        critic_kernel,
        out_shape=jax.ShapeDtypeStruct((OUT_ROWS, OUT_LANES), jnp.float32),
        in_specs=[vmem, vmem, vmem],
        out_specs=vmem,
        scratch_shapes=[pltpu.VMEM((OUT_ROWS, N * H), jnp.float32)],
        cost_estimate=pl.CostEstimate(
            flops=int(flops),
            transcendentals=int(transcendentals),
            bytes_accessed=int(bytes_accessed),
        ),
    )(x_flat, spack, wpack)
    # TODO(synk): for many graphs/rollouts, add a leading "parallel" grid axis over
    # batches to use v7x's second TensorCore and amortize launch overhead.
    return out[:B, :1]


def reference_forward(features, params, anorm):
    anorm = jnp.asarray(anorm)
    h1 = jnp.tanh(jnp.einsum("ij,bjf->bif", anorm, features @ params["w1"]) + params["b1"])
    h2 = jnp.tanh(jnp.einsum("ij,bjh->bih", anorm, h1 @ params["w2"]) + params["b2"])
    flat = h2.reshape(features.shape[0], -1)
    z1 = jnp.tanh(flat @ params["wv1"] + params["bv1"])
    return jnp.tanh(z1 @ params["wv2"] + params["bv2"])


if __name__ == "__main__":
    key = jax.random.PRNGKey(0)
    ks = jax.random.split(key, 9)

    # deterministic ring graph (undirected -> both directions), edge_index [2, 2N]
    src = np.arange(N_NODES)
    dst = (src + 1) % N_NODES
    edge_index = np.concatenate([np.stack([src, dst]), np.stack([dst, src])], axis=1)
    anorm = gcn_norm_adj(edge_index, N_NODES)

    C = N_NODES * HIDDEN
    params = {
        "w1": jax.random.normal(ks[0], (N_FEATS, HIDDEN), jnp.float32) * 0.1,
        "b1": jax.random.normal(ks[1], (1, HIDDEN), jnp.float32) * 0.01,
        "w2": jax.random.normal(ks[2], (HIDDEN, HIDDEN), jnp.float32) * 0.1,
        "b2": jax.random.normal(ks[3], (1, HIDDEN), jnp.float32) * 0.01,
        "wv1": jax.random.normal(ks[4], (C, VALUE_HIDDEN), jnp.float32) * 0.05,
        "bv1": jax.random.normal(ks[5], (1, VALUE_HIDDEN), jnp.float32) * 0.01,
        "wv2": jax.random.normal(ks[6], (VALUE_HIDDEN, 1), jnp.float32) * 0.05,
        "bv2": jax.random.normal(ks[7], (1, 1), jnp.float32) * 0.01,
    }
    features = jax.random.normal(ks[8], (BATCH, N_NODES, N_FEATS), jnp.float32)

    # One-time parameter prep (kron + packing), hoisted out of the per-call path.
    spack, wpack = prepare_critic_params(params, anorm, BATCH)

    forward = jax.jit(model_critic_forward)
    out = forward(features, spack, wpack)
    jax.block_until_ready(out)

    ref = reference_forward(features, params, anorm)
    assert out.shape == (BATCH, 1)
    np.testing.assert_allclose(np.asarray(out), np.asarray(ref), rtol=1e-5, atol=1e-5)
    print("KERNEL_OK")
</pallas_src>

<mosaic_0001>
module attributes {stable_mosaic.version = 11 : i64} {
  func.func @critic_kernel(%arg0: memref<16x4xf32, #tpu.memory_space<vmem>>, %arg1: memref<64x32xf32, #tpu.memory_space<vmem>>, %arg2: memref<264x512xf32, #tpu.memory_space<vmem>>, %arg3: memref<8x128xf32, #tpu.memory_space<vmem>>, %arg4: memref<8x256xf32, #tpu.memory_space<vmem>>) attributes {dimension_semantics = [], scalar_prefetch = 0 : i64, scratch_operands = 1 : i64, tpu.core_type = #tpu.core_type<tc>} {
    %c0 = arith.constant 0 : index
    %c0_0 = arith.constant 0 : index
    %0 = vector.load %arg1[%c0, %c0_0] : memref<64x32xf32, #tpu.memory_space<vmem>>, vector<16x16xf32>
    %c16 = arith.constant 16 : index
    %c0_1 = arith.constant 0 : index
    %1 = vector.load %arg1[%c16, %c0_1] : memref<64x32xf32, #tpu.memory_space<vmem>>, vector<4x32xf32>
    %c24 = arith.constant 24 : index
    %c0_2 = arith.constant 0 : index
    %2 = vector.load %arg1[%c24, %c0_2] : memref<64x32xf32, #tpu.memory_space<vmem>>, vector<32x32xf32>
    %c56 = arith.constant 56 : index
    %c0_3 = arith.constant 0 : index
    %3 = vector.load %arg1[%c56, %c0_3] : memref<64x32xf32, #tpu.memory_space<vmem>>, vector<1x32xf32>
    %c57 = arith.constant 57 : index
    %c0_4 = arith.constant 0 : index
    %4 = vector.load %arg1[%c57, %c0_4] : memref<64x32xf32, #tpu.memory_space<vmem>>, vector<1x32xf32>
    %c0_5 = arith.constant 0 : index
    %c0_6 = arith.constant 0 : index
    %5 = vector.load %arg0[%c0_5, %c0_6] : memref<16x4xf32, #tpu.memory_space<vmem>>, vector<16x4xf32>
    %cst = arith.constant dense<0.000000e+00> : vector<16x4xf32>
    %6 = tpu.matmul %0, %5, %cst {dimension_numbers = #tpu.dot_dimension_numbers<[1], [0], [0], [1], [0, 0, 1, 1], [], []>} : vector<16x16xf32>, vector<16x4xf32>, vector<16x4xf32> -> vector<16x4xf32>
    %cst_7 = arith.constant dense<0.000000e+00> : vector<16x32xf32>
    %7 = tpu.matmul %6, %1, %cst_7 {dimension_numbers = #tpu.dot_dimension_numbers<[1], [0], [0], [1], [0, 0, 1, 1], [], []>} : vector<16x4xf32>, vector<4x32xf32>, vector<16x32xf32> -> vector<16x32xf32>
    %8 = vector.broadcast %3 : vector<1x32xf32> to vector<16x32xf32>
    %9 = arith.addf %7, %8 : vector<16x32xf32>
    %10 = math.tanh %9 : vector<16x32xf32>
    %cst_8 = arith.constant dense<0.000000e+00> : vector<16x32xf32>
    %11 = tpu.matmul %0, %10, %cst_8 {dimension_numbers = #tpu.dot_dimension_numbers<[1], [0], [0], [1], [0, 0, 1, 1], [], []>} : vector<16x16xf32>, vector<16x32xf32>, vector<16x32xf32> -> vector<16x32xf32>
    %cst_9 = arith.constant dense<0.000000e+00> : vector<16x32xf32>
    %12 = tpu.matmul %11, %2, %cst_9 {dimension_numbers = #tpu.dot_dimension_numbers<[1], [0], [0], [1], [0, 0, 1, 1], [], []>} : vector<16x32xf32>, vector<32x32xf32>, vector<16x32xf32> -> vector<16x32xf32>
    %13 = vector.broadcast %4 : vector<1x32xf32> to vector<16x32xf32>
    %14 = arith.addf %12, %13 : vector<16x32xf32>
    %15 = math.tanh %14 : vector<16x32xf32>
    %cst_10 = arith.constant 0.000000e+00 : f32
    %16 = vector.broadcast %cst_10 : f32 to vector<8x256xf32>
    %c0_11 = arith.constant 0 : index
    %c0_12 = arith.constant 0 : index
    %17 = vector.load %arg4[%c0_11, %c0_12] : memref<8x256xf32, #tpu.memory_space<vmem>>, vector<8x256xf32>
    tpu.vector_store %arg4[%c0_11, %c0_12], %16 {strides = array<i32>} : memref<8x256xf32, #tpu.memory_space<vmem>>, vector<8x256xf32>,
    %18 = vector.extract_strided_slice %15 {offsets = [0, 0], sizes = [1, 32], strides = [1, 1]} : vector<16x32xf32> to vector<1x32xf32>
    %c0_13 = arith.constant 0 : index
    %c0_14 = arith.constant 0 : index
    %19 = vector.load %arg4[%c0_13, %c0_14] : memref<8x256xf32, #tpu.memory_space<vmem>>, vector<1x32xf32>
    tpu.vector_store %arg4[%c0_13, %c0_14], %18 {strides = array<i32>} : memref<8x256xf32, #tpu.memory_space<vmem>>, vector<1x32xf32>,
    %20 = vector.extract_strided_slice %15 {offsets = [1, 0], sizes = [1, 32], strides = [1, 1]} : vector<16x32xf32> to vector<1x32xf32>
    %c0_15 = arith.constant 0 : index
    %c32 = arith.constant 32 : index
    %21 = vector.load %arg4[%c0_15, %c32] : memref<8x256xf32, #tpu.memory_space<vmem>>, vector<1x32xf32>
    tpu.vector_store %arg4[%c0_15, %c32], %20 {strides = array<i32>} : memref<8x256xf32, #tpu.memory_space<vmem>>, vector<1x32xf32>,
    %22 = vector.extract_strided_slice %15 {offsets = [2, 0], sizes = [1, 32], strides = [1, 1]} : vector<16x32xf32> to vector<1x32xf32>
    %c0_16 = arith.constant 0 : index
    %c64 = arith.constant 64 : index
    %23 = vector.load %arg4[%c0_16, %c64] : memref<8x256xf32, #tpu.memory_space<vmem>>, vector<1x32xf32>
    tpu.vector_store %arg4[%c0_16, %c64], %22 {strides = array<i32>} : memref<8x256xf32, #tpu.memory_space<vmem>>, vector<1x32xf32>,
    %24 = vector.extract_strided_slice %15 {offsets = [3, 0], sizes = [1, 32], strides = [1, 1]} : vector<16x32xf32> to vector<1x32xf32>
    %c0_17 = arith.constant 0 : index
    %c96 = arith.constant 96 : index
    %25 = vector.load %arg4[%c0_17, %c96] : memref<8x256xf32, #tpu.memory_space<vmem>>, vector<1x32xf32>
    tpu.vector_store %arg4[%c0_17, %c96], %24 {strides = array<i32>} : memref<8x256xf32, #tpu.memory_space<vmem>>, vector<1x32xf32>,
    %26 = vector.extract_strided_slice %15 {offsets = [4, 0], sizes = [1, 32], strides = [1, 1]} : vector<16x32xf32> to vector<1x32xf32>
    %c0_18 = arith.constant 0 : index
    %c128 = arith.constant 128 : index
    %27 = vector.load %arg4[%c0_18, %c128] : memref<8x256xf32, #tpu.memory_space<vmem>>, vector<1x32xf32>
    tpu.vector_store %arg4[%c0_18, %c128], %26 {strides = array<i32>} : memref<8x256xf32, #tpu.memory_space<vmem>>, vector<1x32xf32>,
    %28 = vector.extract_strided_slice %15 {offsets = [5, 0], sizes = [1, 32], strides = [1, 1]} : vector<16x32xf32> to vector<1x32xf32>
    %c0_19 = arith.constant 0 : index
    %c160 = arith.constant 160 : index
    %29 = vector.load %arg4[%c0_19, %c160] : memref<8x256xf32, #tpu.memory_space<vmem>>, vector<1x32xf32>
    tpu.vector_store %arg4[%c0_19, %c160], %28 {strides = array<i32>} : memref<8x256xf32, #tpu.memory_space<vmem>>, vector<1x32xf32>,
    %30 = vector.extract_strided_slice %15 {offsets = [6, 0], sizes = [1, 32], strides = [1, 1]} : vector<16x32xf32> to vector<1x32xf32>
    %c0_20 = arith.constant 0 : index
    %c192 = arith.constant 192 : index
    %31 = vector.load %arg4[%c0_20, %c192] : memref<8x256xf32, #tpu.memory_space<vmem>>, vector<1x32xf32>
    tpu.vector_store %arg4[%c0_20, %c192], %30 {strides = array<i32>} : memref<8x256xf32, #tpu.memory_space<vmem>>, vector<1x32xf32>,
    %32 = vector.extract_strided_slice %15 {offsets = [7, 0], sizes = [1, 32], strides = [1, 1]} : vector<16x32xf32> to vector<1x32xf32>
    %c0_21 = arith.constant 0 : index
    %c224 = arith.constant 224 : index
    %33 = vector.load %arg4[%c0_21, %c224] : memref<8x256xf32, #tpu.memory_space<vmem>>, vector<1x32xf32>
    tpu.vector_store %arg4[%c0_21, %c224], %32 {strides = array<i32>} : memref<8x256xf32, #tpu.memory_space<vmem>>, vector<1x32xf32>,
    %34 = vector.extract_strided_slice %15 {offsets = [8, 0], sizes = [1, 32], strides = [1, 1]} : vector<16x32xf32> to vector<1x32xf32>
    %c1 = arith.constant 1 : index
    %c0_22 = arith.constant 0 : index
    %35 = vector.load %arg4[%c1, %c0_22] : memref<8x256xf32, #tpu.memory_space<vmem>>, vector<1x32xf32>
    tpu.vector_store %arg4[%c1, %c0_22], %34 {strides = array<i32>} : memref<8x256xf32, #tpu.memory_space<vmem>>, vector<1x32xf32>,
    %36 = vector.extract_strided_slice %15 {offsets = [9, 0], sizes = [1, 32], strides = [1, 1]} : vector<16x32xf32> to vector<1x32xf32>
    %c1_23 = arith.constant 1 : index
    %c32_24 = arith.constant 32 : index
    %37 = vector.load %arg4[%c1_23, %c32_24] : memref<8x256xf32, #tpu.memory_space<vmem>>, vector<1x32xf32>
    tpu.vector_store %arg4[%c1_23, %c32_24], %36 {strides = array<i32>} : memref<8x256xf32, #tpu.memory_space<vmem>>, vector<1x32xf32>,
    %38 = vector.extract_strided_slice %15 {offsets = [10, 0], sizes = [1, 32], strides = [1, 1]} : vector<16x32xf32> to vector<1x32xf32>
    %c1_25 = arith.constant 1 : index
    %c64_26 = arith.constant 64 : index
    %39 = vector.load %arg4[%c1_25, %c64_26] : memref<8x256xf32, #tpu.memory_space<vmem>>, vector<1x32xf32>
    tpu.vector_store %arg4[%c1_25, %c64_26], %38 {strides = array<i32>} : memref<8x256xf32, #tpu.memory_space<vmem>>, vector<1x32xf32>,
    %40 = vector.extract_strided_slice %15 {offsets = [11, 0], sizes = [1, 32], strides = [1, 1]} : vector<16x32xf32> to vector<1x32xf32>
    %c1_27 = arith.constant 1 : index
    %c96_28 = arith.constant 96 : index
    %41 = vector.load %arg4[%c1_27, %c96_28] : memref<8x256xf32, #tpu.memory_space<vmem>>, vector<1x32xf32>
    tpu.vector_store %arg4[%c1_27, %c96_28], %40 {strides = array<i32>} : memref<8x256xf32, #tpu.memory_space<vmem>>, vector<1x32xf32>,
    %42 = vector.extract_strided_slice %15 {offsets = [12, 0], sizes = [1, 32], strides = [1, 1]} : vector<16x32xf32> to vector<1x32xf32>
    %c1_29 = arith.constant 1 : index
    %c128_30 = arith.constant 128 : index
    %43 = vector.load %arg4[%c1_29, %c128_30] : memref<8x256xf32, #tpu.memory_space<vmem>>, vector<1x32xf32>
    tpu.vector_store %arg4[%c1_29, %c128_30], %42 {strides = array<i32>} : memref<8x256xf32, #tpu.memory_space<vmem>>, vector<1x32xf32>,
    %44 = vector.extract_strided_slice %15 {offsets = [13, 0], sizes = [1, 32], strides = [1, 1]} : vector<16x32xf32> to vector<1x32xf32>
    %c1_31 = arith.constant 1 : index
    %c160_32 = arith.constant 160 : index
    %45 = vector.load %arg4[%c1_31, %c160_32] : memref<8x256xf32, #tpu.memory_space<vmem>>, vector<1x32xf32>
    tpu.vector_store %arg4[%c1_31, %c160_32], %44 {strides = array<i32>} : memref<8x256xf32, #tpu.memory_space<vmem>>, vector<1x32xf32>,
    %46 = vector.extract_strided_slice %15 {offsets = [14, 0], sizes = [1, 32], strides = [1, 1]} : vector<16x32xf32> to vector<1x32xf32>
    %c1_33 = arith.constant 1 : index
    %c192_34 = arith.constant 192 : index
    %47 = vector.load %arg4[%c1_33, %c192_34] : memref<8x256xf32, #tpu.memory_space<vmem>>, vector<1x32xf32>
    tpu.vector_store %arg4[%c1_33, %c192_34], %46 {strides = array<i32>} : memref<8x256xf32, #tpu.memory_space<vmem>>, vector<1x32xf32>,
    %48 = vector.extract_strided_slice %15 {offsets = [15, 0], sizes = [1, 32], strides = [1, 1]} : vector<16x32xf32> to vector<1x32xf32>
    %c1_35 = arith.constant 1 : index
    %c224_36 = arith.constant 224 : index
    %49 = vector.load %arg4[%c1_35, %c224_36] : memref<8x256xf32, #tpu.memory_space<vmem>>, vector<1x32xf32>
    tpu.vector_store %arg4[%c1_35, %c224_36], %48 {strides = array<i32>} : memref<8x256xf32, #tpu.memory_space<vmem>>, vector<1x32xf32>,
    %c0_37 = arith.constant 0 : index
    %c0_38 = arith.constant 0 : index
    %50 = vector.load %arg4[%c0_37, %c0_38] : memref<8x256xf32, #tpu.memory_space<vmem>>, vector<8x256xf32>
    %c0_39 = arith.constant 0 : index
    %c0_40 = arith.constant 0 : index
    %51 = vector.load %arg2[%c0_39, %c0_40] : memref<264x512xf32, #tpu.memory_space<vmem>>, vector<256x512xf32>
    %c256 = arith.constant 256 : index
    %c0_41 = arith.constant 0 : index
    %52 = vector.load %arg2[%c256, %c0_41] : memref<264x512xf32, #tpu.memory_space<vmem>>, vector<1x512xf32>
    %c257 = arith.constant 257 : index
    %c0_42 = arith.constant 0 : index
    %53 = vector.load %arg2[%c257, %c0_42] : memref<264x512xf32, #tpu.memory_space<vmem>>, vector<1x512xf32>
    %c258 = arith.constant 258 : index
    %c0_43 = arith.constant 0 : index
    %54 = vector.load %arg2[%c258, %c0_43] : memref<264x512xf32, #tpu.memory_space<vmem>>, vector<1x1xf32>
    %cst_44 = arith.constant dense<0.000000e+00> : vector<8x512xf32>
    %55 = tpu.matmul %50, %51, %cst_44 {dimension_numbers = #tpu.dot_dimension_numbers<[1], [0], [0], [1], [0, 0, 1, 1], [], []>} : vector<8x256xf32>, vector<256x512xf32>, vector<8x512xf32> -> vector<8x512xf32>
    %56 = vector.broadcast %52 : vector<1x512xf32> to vector<8x512xf32>
    %57 = arith.addf %55, %56 : vector<8x512xf32>
    %58 = math.tanh %57 : vector<8x512xf32>
    %59 = vector.broadcast %53 : vector<1x512xf32> to vector<8x512xf32>
    %60 = arith.mulf %58, %59 : vector<8x512xf32>
    %cst_45 = arith.constant dense<0.000000e+00> : vector<8xf32>
    %61 = vector.multi_reduction <add>, %60, %cst_45 [1] : vector<8x512xf32> to vector<8xf32>
    %62 = vector.shape_cast %61 : vector<8xf32> to vector<8x1xf32>
    %63 = vector.broadcast %54 : vector<1x1xf32> to vector<8x1xf32>
    %64 = arith.addf %62, %63 : vector<8x1xf32>
    %65 = math.tanh %64 : vector<8x1xf32>
    %66 = vector.shape_cast %65 : vector<8x1xf32> to vector<8x1xf32>
    %67 = vector.broadcast %66 : vector<8x1xf32> to vector<8x128xf32>
    %c0_46 = arith.constant 0 : index
    %c0_47 = arith.constant 0 : index
    %68 = vector.load %arg3[%c0_46, %c0_47] : memref<8x128xf32, #tpu.memory_space<vmem>>, vector<8x128xf32>
    tpu.vector_store %arg3[%c0_46, %c0_47], %67 {strides = array<i32>} : memref<8x128xf32, #tpu.memory_space<vmem>>, vector<8x128xf32>,
    return
  }
}

</mosaic_0001>

<bundles_post_ra>
// kernel: model_critic_forward.1
= control target key start
LH: loop header
LB: loop body
LE: loop exit
PB: predicated region body
PF: predicated region fallthrough
CT: control target
= control target key end

     0   :  { %8 = vsyncpa [#allocation4], 0  ;;  %s643_s15 = smov [#allocation3]   ;;  %s644_s17 = smov 512   ;;  %s737_s0 = inlined_call_operand.vmem [shape: f32[16,4], index: 0, kind: input, shape index: {}]   ;;  %s738_s1 = inlined_call_operand.vmem [shape: f32[64,32], index: 1, kind: input, shape index: {}]   ;;  %s739_s2 = inlined_call_operand.hbm [shape: f32[264,512], index: 2, kind: input, shape index: {}]   ;;  %s740_s3 = inlined_call_operand.vmem [shape: f32[8,128], index: 3, kind: output, shape index: {}]  }
   0x1   :  { %s17_s14 = sshll.u32 %s739_s2, 4  ;;  %s19_s16 = sshll.u32 %s643_s15, 4  ;;  %s18_s14 = int_to_ptr.hbm [resolvable:$true] %s17_s14  ;;  %s20_s16 = int_to_ptr.vmem [resolvable:$true] %s19_s16 }
   0x2   :  { %s645_s18 = smov 32  }
   0x3   :  { %25 = dma.hbm_to_vmem [thread:$0]  %s18_s14, 16896, %s20_s16, [#allocation4], %s644_s17, %s644_s17, %s645_s18  }
   0x4   :  { %641 = dma.done.wait [#allocation4], 16896  }
   0x5   :  { %642 = vsyncadd [#allocation4], 4294950400  ;;  %v40_v0 = vld [vmem:[%s737_s0 + $0x8] sm:$0xff]  ;;  %v39_v1 = vld [vmem:[%s737_s0] sm:$0xff]  ;;  %vm41_vm0 = vcmask 130048   ;;  %vm79_vm1 = vcmask 1043456  }
   0x6   :  { %62 = vmatpush.msra.mxu0 %v40_v0  ;;  %v30_v2 = vld [vmem:[%s738_s1] sm:$0xff]  ;;  %v31_v3 = vld [vmem:[%s738_s1 + $0x8] sm:$0xff]  ;;  %v32_v4 = vld [vmem:[%s738_s1 + $0x10] sm:$0xf]  ;;  %vm72_vm2 = vcmask 31744   ;;  %vm132_vm3 = vcmask 261120  }
   0x7   :  { %581 = vmatpush.msk.msra.mxu1 %vm79_vm1, %v32_v4  ;;  %v36_v7 = vld [vmem:[%s738_s1 + $0x30] sm:$0xff]  ;;  %v35_v8 = vld [vmem:[%s738_s1 + $0x28] sm:$0xff]  ;;  %v34_v9 = vld [vmem:[%s738_s1 + $0x20] sm:$0xff]  ;;  %v646_v20 = vmov 0.0   ;;  %vm166_vm4 = vcmask 253952   ;;  %s648_s12 = smov 64  }
   0x8   :  { %63 = vmatpush.msra.mxu0 %v39_v1  ;;  %151 = vmatpush.msra.mxu3 %v36_v7  ;;  %v597_v11 = vld [vmem:[%s738_s1 + $0x38] ss:$0 sm:$0xff]  ;;  %165 = vst [vmem:[#allocation2 + $0x8] sm:$0xff] %v646_v20  ;;  %v598_v21 = vld [vmem:[%s738_s1 + $0x39] ss:$0 sm:$0xff]  ;;  %v302_v24 = vld [vmem:[#allocation3 + $0x1e0] sm:$0xff] }
   0x9   :  { %579 = vmatmul.msk.f32.vlgmr.msra.gmra.mxu0 %vm41_vm0, %v30_v2  ;;  %v33_v17 = vld [vmem:[%s738_s1 + $0x18] sm:$0xff]  ;;  %164 = vst [vmem:[#allocation2] sm:$0xff] %v646_v20  ;;  %v298_v26 = vld [vmem:[#allocation3 + $0x1c0] sm:$0xff]  ;;  %384 = vmatpush.msrb.mxu1 %v302_v24  ;;  %s647_s1 = smov 96   ;;  %vm173_vm5 = vcmask 516352   ;;  %vm179_vm6 = vcmask 778752  }
   0xa   :  { %152 = vmatpush.msra.mxu3 %v35_v8  ;;  %v303_v25 = vld [vmem:[#allocation3 + $0x1e8] sm:$0xff]  ;;  %v294_v28 = vld [vmem:[#allocation3 + $0x1a0] sm:$0xff]  ;;  %vm185_vm7 = vcmask 1041152  }
   0xb   :  { %v299_v27 = vld [vmem:[#allocation3 + $0x1c8] sm:$0xff]  ;;  %385 = vmatpush.msrb.mxu1 %v298_v26  ;;  %v290_v48 = vld [vmem:[#allocation3 + $0x180] sm:$0xff] }
   0xc   :  { %153 = vmatpush.msra.mxu3 %v34_v9  ;;  %v295_v29 = vld [vmem:[#allocation3 + $0x1a8] sm:$0xff]  ;;  %v286_v50 = vld [vmem:[#allocation3 + $0x160] sm:$0xff] }
   0xd   :  { %386 = vmatpush.msrb.mxu1 %v294_v28  ;;  %v291_v49 = vld [vmem:[#allocation3 + $0x188] sm:$0xff]  ;;  %v366_v52 = vld [vmem:[#allocation3 + $0x3e0] sm:$0xff] }
   0xe   :  { %154 = vmatpush.msra.mxu3 %v33_v17  ;;  %v287_v51 = vld [vmem:[#allocation3 + $0x168] sm:$0xff]  ;;  %404 = vmatpush.msrb.mxu0 %v366_v52  ;;  %v282_v54 = vld [vmem:[#allocation3 + $0x140] sm:$0xff]  ;;  %v289_v52 = vld [vmem:[#allocation3 + $0x178] sm:$0xff] }
   0xf   :  { %387 = vmatpush.msrb.mxu1 %v290_v48  ;;  %v367_v53 = vld [vmem:[#allocation3 + $0x3e8] sm:$0xff]  ;;  %v362_v56 = vld [vmem:[#allocation3 + $0x3c0] sm:$0xff] }
  0x10   :  { %444 = vmatpush.msrb.mxu3 %v367_v53  ;;  %v283_v55 = vld [vmem:[#allocation3 + $0x148] sm:$0xff]  ;;  %v278_v58 = vld [vmem:[#allocation3 + $0x120] sm:$0xff]  ;;  %405 = vmatpush.msrb.mxu0 %v362_v56  ;;  %v368_v53 = vld [vmem:[#allocation3 + $0x3f0] sm:$0xff] }
  0x11   :  { %580 = vmatmul.msk.f32.gmra.mxu0 %vm41_vm0, %v31_v3  ;;  %388 = vmatpush.msrb.mxu1 %v286_v50  ;;  %v363_v57 = vld [vmem:[#allocation3 + $0x3c8] sm:$0xff]  ;;  %v358_v60 = vld [vmem:[#allocation3 + $0x3a0] sm:$0xff]  ;;  %v285_v56 = vld [vmem:[#allocation3 + $0x158] sm:$0xff] }
  0x12   :  { %445 = vmatpush.msrb.mxu3 %v363_v57  ;;  %v279_v59 = vld [vmem:[#allocation3 + $0x128] sm:$0xff]  ;;  %406 = vmatpush.msrb.mxu0 %v358_v60  ;;  %v274_v62 = vld [vmem:[#allocation3 + $0x100] sm:$0xff]  ;;  %v364_v57 = vld [vmem:[#allocation3 + $0x3d0] sm:$0xff] }
  0x13   :  { %v359_v61 = vld [vmem:[#allocation3 + $0x3a8] sm:$0xff]  ;;  %389 = vmatpush.msrb.mxu1 %v282_v54  ;;  %v354_v0 = vld [vmem:[#allocation3 + $0x380] sm:$0xff]  ;;  %v369_v54 = vld [vmem:[#allocation3 + $0x3f8] sm:$0xff] }
  0x14   :  { %446 = vmatpush.msrb.mxu3 %v359_v61  ;;  %v275_v63 = vld [vmem:[#allocation3 + $0x108] sm:$0xff]  ;;  %407 = vmatpush.msrb.mxu0 %v354_v0  ;;  %v350_v4 = vld [vmem:[#allocation3 + $0x360] sm:$0xff]  ;;  %v281_v60 = vld [vmem:[#allocation3 + $0x138] sm:$0xff] }
  0x15   :  { %390 = vmatpush.msrb.mxu1 %v278_v58  ;;  %v355_v1 = vld [vmem:[#allocation3 + $0x388] sm:$0xff]  ;;  %v346_v8 = vld [vmem:[#allocation3 + $0x340] sm:$0xff]  ;;  %v365_v58 = vld [vmem:[#allocation3 + $0x3d8] sm:$0xff] }
  0x16   :  { %447 = vmatpush.msrb.mxu3 %v355_v1  ;;  %v267_v7 = vld [vmem:[#allocation3 + $0xc8] sm:$0xff]  ;;  %408 = vmatpush.msrb.mxu0 %v350_v4  ;;  %v334_v20 = vld [vmem:[#allocation3 + $0x2e0] sm:$0xff]  ;;  %v360_v61 = vld [vmem:[#allocation3 + $0x3b0] sm:$0xff] }
  0x17   :  { %391 = vmatpush.msrb.mxu1 %v274_v62  ;;  %v347_v9 = vld [vmem:[#allocation3 + $0x348] sm:$0xff]  ;;  %v330_v24 = vld [vmem:[#allocation3 + $0x2c0] sm:$0xff]  ;;  %v361_v62 = vld [vmem:[#allocation3 + $0x3b8] sm:$0xff] }
  0x18   :  { %409 = vmatpush.msrb.mxu0 %v346_v8  ;;  %v339_v17 = vld [vmem:[#allocation3 + $0x308] sm:$0xff]  ;;  %v246_v26 = vld [vmem:[#allocation3 + $0x20] sm:$0xff]  ;;  %v277_v0 = vld [vmem:[#allocation3 + $0x118] sm:$0xff] }
  0x19   :  { %v326_v28 = vld [vmem:[#allocation3 + $0x2a0] sm:$0xff]  ;;  %v307_v50 = vld [vmem:[#allocation3 + $0x208] sm:$0xff]  ;;  %v272_v4 = vld [vmem:[#allocation3 + $0xf0] sm:$0xff] }
  0x1a   :  { %v268_v8 = vld [vmem:[#allocation3 + $0xd0] sm:$0xff] }
  0x86   :  { %v65_v5 = vpop.f32.mrf.mxu0 }
  0x87   :  { %582 = vmatmul.msk.f32.vlgmr.msra.gmra.mxu1 %vm72_vm2, %v65_v5  ;;  %v351_v5 = vld [vmem:[#allocation3 + $0x368] sm:$0xff] }
  0x88   :  { %448 = vmatpush.msrb.mxu3 %v351_v5  ;;  %v273_v5 = vld [vmem:[#allocation3 + $0xf8] sm:$0xff] }
  0x8a   :  { %449 = vmatpush.msrb.mxu3 %v347_v9  ;;  %v269_v9 = vld [vmem:[#allocation3 + $0xd8] sm:$0xff] }
  0x8e   :  { %v68_v6 = vpop.f32.mrf.mxu0 }
  0x8f   :  { %583 = vmatmul.msk.f32.gmra.mxu1 %vm72_vm2, %v68_v6  ;;  %v266_v6 = vld [vmem:[#allocation3 + $0xc0] sm:$0xff] }
 0x104   :  { %v100_v10 = vpop.f32.mrf.mxu1 }
 0x105   :  { %v101_v13 = vadd.f32 %v597_v11, %v100_v10  ;;  %v262_v10 = vld [vmem:[#allocation3 + $0xa0] sm:$0xff] }
 0x10c   :  { %v103_v12 = vpop.f32.mrf.mxu1 }
 0x10d   :  { %v104_v14 = vadd.f32 %v597_v11, %v103_v12  ;;  %v263_v11 = vld [vmem:[#allocation3 + $0xa8] sm:$0xff]  ;;  %v342_v12 = vld [vmem:[#allocation3 + $0x320] sm:$0xff] }
 0x10e   :  { %410 = vmatpush.msrb.mxu0 %v342_v12  ;;  %v264_v12 = vld [vmem:[#allocation3 + $0xb0] sm:$0xff] }
 0x10f   :  { %599 = vtanh.f32 %v104_v14  ;;  %v258_v14 = vld [vmem:[#allocation3 + $0x80] sm:$0xff] }
 0x110   :  { %601 = vtanh.f32 %v101_v13  ;;  %v343_v13 = vld [vmem:[#allocation3 + $0x328] sm:$0xff] }
 0x111   :  { %450 = vmatpush.msrb.mxu3 %v343_v13  ;;  %v265_v13 = vld [vmem:[#allocation3 + $0xb8] sm:$0xff] }
 0x113   :  { %451 = vmatpush.msrb.mxu3 %v339_v17  ;;  %v261_v17 = vld [vmem:[#allocation3 + $0x98] sm:$0xff] }
 0x115   :  { %v600_v15 = vpop.eup %599 }
 0x116   :  { %122 = vmatpush.msra.mxu2 %v600_v15  ;;  %v602_v16 = vpop.eup %601  ;;  %v259_v15 = vld [vmem:[#allocation3 + $0x88] sm:$0xff] }
 0x118   :  { %123 = vmatpush.msra.mxu2 %v602_v16  ;;  %v338_v16 = vld [vmem:[#allocation3 + $0x300] sm:$0xff] }
 0x119   :  { %584 = vmatmul.msk.f32.vlgmr.msra.gmra.mxu2 %vm41_vm0, %v30_v2  ;;  %v270_v2 = vld [vmem:[#allocation3 + $0xe0] sm:$0xff]  ;;  %411 = vmatpush.msrb.mxu0 %v338_v16  ;;  %v260_v16 = vld [vmem:[#allocation3 + $0x90] sm:$0xff] }
 0x11a   :  { %424 = vmatpush.msrb.mxu2 %v303_v25  ;;  %392 = vmatpush.msrb.mxu1 %v270_v2  ;;  %v331_v25 = vld [vmem:[#allocation3 + $0x2c8] sm:$0xff]  ;;  %v356_v2 = vld [vmem:[#allocation3 + $0x390] sm:$0xff] }
 0x11b   :  { %412 = vmatpush.msrb.mxu0 %v334_v20  ;;  %v341_v20 = vld [vmem:[#allocation3 + $0x318] sm:$0xff] }
 0x11c   :  { %425 = vmatpush.msrb.mxu2 %v299_v27  ;;  %393 = vmatpush.msrb.mxu1 %v266_v6  ;;  %v247_v27 = vld [vmem:[#allocation3 + $0x28] sm:$0xff]  ;;  %v352_v6 = vld [vmem:[#allocation3 + $0x370] sm:$0xff] }
 0x11d   :  { %413 = vmatpush.msrb.mxu0 %v330_v24  ;;  %v337_v24 = vld [vmem:[#allocation3 + $0x2f8] sm:$0xff] }
 0x11e   :  { %426 = vmatpush.msrb.mxu2 %v295_v29  ;;  %394 = vmatpush.msrb.mxu1 %v262_v10  ;;  %v327_v29 = vld [vmem:[#allocation3 + $0x2a8] sm:$0xff]  ;;  %v348_v10 = vld [vmem:[#allocation3 + $0x350] sm:$0xff] }
 0x11f   :  { %414 = vmatpush.msrb.mxu0 %v326_v28  ;;  %v333_v28 = vld [vmem:[#allocation3 + $0x2d8] sm:$0xff] }
 0x120   :  { %427 = vmatpush.msrb.mxu2 %v291_v49  ;;  %395 = vmatpush.msrb.mxu1 %v258_v14  ;;  %v306_v49 = vld [vmem:[#allocation3 + $0x200] sm:$0xff]  ;;  %v344_v14 = vld [vmem:[#allocation3 + $0x330] sm:$0xff] }
 0x121   :  { %585 = vmatmul.msk.f32.gmra.mxu2 %vm41_vm0, %v31_v3  ;;  %v271_v3 = vld [vmem:[#allocation3 + $0xe8] sm:$0xff] }
 0x122   :  { %428 = vmatpush.msrb.mxu2 %v287_v51  ;;  %v288_v51 = vld [vmem:[#allocation3 + $0x170] sm:$0xff] }
 0x124   :  { %429 = vmatpush.msrb.mxu2 %v283_v55  ;;  %v284_v55 = vld [vmem:[#allocation3 + $0x150] sm:$0xff] }
 0x126   :  { %430 = vmatpush.msrb.mxu2 %v279_v59  ;;  %v280_v59 = vld [vmem:[#allocation3 + $0x130] sm:$0xff] }
 0x128   :  { %431 = vmatpush.msrb.mxu2 %v275_v63  ;;  %v276_v63 = vld [vmem:[#allocation3 + $0x110] sm:$0xff] }
 0x12a   :  { %432 = vmatpush.msrb.mxu2 %v271_v3  ;;  %v357_v3 = vld [vmem:[#allocation3 + $0x398] sm:$0xff] }
 0x12c   :  { %433 = vmatpush.msrb.mxu2 %v267_v7  ;;  %v353_v7 = vld [vmem:[#allocation3 + $0x378] sm:$0xff] }
 0x12e   :  { %434 = vmatpush.msrb.mxu2 %v263_v11  ;;  %v349_v11 = vld [vmem:[#allocation3 + $0x358] sm:$0xff] }
 0x130   :  { %435 = vmatpush.msrb.mxu2 %v259_v15  ;;  %v345_v15 = vld [vmem:[#allocation3 + $0x338] sm:$0xff] }
 0x19c   :  { %v125_v18 = vpop.f32.mrf.mxu2 }
 0x19d   :  { %586 = vmatmul.msk.f32.vlgmr.msra.gmra.mxu3 %vm132_vm3, %v125_v18  ;;  %v254_v18 = vld [vmem:[#allocation3 + $0x60] sm:$0xff] }
 0x19e   :  { %396 = vmatpush.msrb.mxu1 %v254_v18 }
 0x1a4   :  { %v128_v19 = vpop.f32.mrf.mxu2 }
 0x1a5   :  { %587 = vmatmul.msk.f32.gmra.mxu3 %vm132_vm3, %v128_v19  ;;  %v255_v19 = vld [vmem:[#allocation3 + $0x68] sm:$0xff] }
 0x1a6   :  { %436 = vmatpush.msrb.mxu2 %v255_v19  ;;  %v340_v19 = vld [vmem:[#allocation3 + $0x310] sm:$0xff] }
 0x220   :  { %v156_v22 = vpop.f32.mrf.mxu3 }
 0x221   :  { %v157_v23 = vadd.f32 %v598_v21, %v156_v22  ;;  %v250_v22 = vld [vmem:[#allocation3 + $0x40] sm:$0xff] }
 0x222   :  { %397 = vmatpush.msrb.mxu1 %v250_v22  ;;  %v257_v22 = vld [vmem:[#allocation3 + $0x78] sm:$0xff] }
 0x223   :  { %603 = vtanh.f32 %v157_v23  ;;  %v251_v23 = vld [vmem:[#allocation3 + $0x48] sm:$0xff] }
 0x224   :  { %437 = vmatpush.msrb.mxu2 %v251_v23  ;;  %398 = vmatpush.msrb.mxu1 %v246_v26  ;;  %v336_v23 = vld [vmem:[#allocation3 + $0x2f0] sm:$0xff]  ;;  %v253_v26 = vld [vmem:[#allocation3 + $0x58] sm:$0xff] }
 0x226   :  { %438 = vmatpush.msrb.mxu2 %v247_v27  ;;  %v332_v27 = vld [vmem:[#allocation3 + $0x2d0] sm:$0xff] }
 0x228   :  { %v159_v30 = vpop.f32.mrf.mxu3 }
 0x229   :  { %v604_v31 = vpop.eup %603  ;;  %v160_v32 = vadd.f32 %v598_v21, %v159_v30  ;;  %v335_v21 = vld [vmem:[#allocation3 + $0x2e8] sm:$0xff]  ;;  %v242_v30 = vld [vmem:[#allocation3] sm:$0xff] }
 0x22a   :  { %v181_v33 = vrot.slane %v604_v31, 3  ;;  %v175_v34 = vrot.slane %v604_v31, 2  ;;  %v169_v35 = vrot.slane %v604_v31, 1  ;;  %167 = vst.msk [vmem:[#allocation2] sm:$0x1] %vm166_vm4, %v604_v31  ;;  %v187_v36 = vrot.slane %v604_v31, 4  ;;  %452 = vmatpush.msrb.mxu3 %v335_v21  ;;  %399 = vmatpush.msrb.mxu1 %v242_v30 }
 0x22b   :  { %605 = vtanh.f32 %v160_v32  ;;  %v190_v38 = vrot.slane %v604_v31, 5  ;;  %v195_v42 = vrot.slane %v604_v31, 6  ;;  %v200_v46 = vrot.slane %v604_v31, 7  ;;  %v243_v31 = vld [vmem:[#allocation3 + $0x8] sm:$0xff]  ;;  %v322_v32 = vld [vmem:[#allocation3 + $0x280] sm:$0xff]  ;;  %v256_v21 = vld [vmem:[#allocation3 + $0x70] sm:$0xff] }
 0x22c   :  { %182 = vrot.lane.b32.xlu2 %v181_v33, %s647_s1  ;;  %176 = vrot.lane.b32.xlu1 %v175_v34, %s648_s12  ;;  %189 = vst.msk [vmem:[#allocation2 + $0x8] sm:$0x1] %vm166_vm4, %v187_v36  ;;  %v323_v33 = vld [vmem:[#allocation3 + $0x288] sm:$0xff]  ;;  %v304_v34 = vld [vmem:[#allocation3 + $0x1f0] sm:$0xff]  ;;  %v318_v36 = vld [vmem:[#allocation3 + $0x260] sm:$0xff] }
 0x22d   :  { %170 = vrot.lane.b32.xlu0 %v169_v35, %s645_s18  ;;  %453 = vmatpush.msrb.mxu3 %v331_v25  ;;  %v305_v35 = vld [vmem:[#allocation3 + $0x1f8] sm:$0xff]  ;;  %v252_v25 = vld [vmem:[#allocation3 + $0x50] sm:$0xff] }
 0x22e   :  { %439 = vmatpush.msrb.mxu2 %v243_v31  ;;  %415 = vmatpush.msrb.mxu0 %v322_v32  ;;  %v249_v30 = vld [vmem:[#allocation3 + $0x38] sm:$0xff]  ;;  %v328_v31 = vld [vmem:[#allocation3 + $0x2b0] sm:$0xff] }
 0x22f   :  { %454 = vmatpush.msrb.mxu3 %v327_v29  ;;  %464 = vmatpush.msra.mxu1 %v304_v34  ;;  %v248_v29 = vld [vmem:[#allocation3 + $0x30] sm:$0xff]  ;;  %v329_v32 = vld [vmem:[#allocation3 + $0x2b8] sm:$0xff] }
 0x230   :  { %504 = vmatpush.msra.mxu2 %v305_v35  ;;  %416 = vmatpush.msrb.mxu0 %v318_v36  ;;  %v245_v34 = vld [vmem:[#allocation3 + $0x18] sm:$0xff] }
 0x231   :  { %v606_v37 = vpop.eup %605  ;;  %455 = vmatpush.msrb.mxu3 %v323_v33  ;;  %v244_v33 = vld [vmem:[#allocation3 + $0x10] sm:$0xff] }
 0x232   :  { %v212_v39 = vrot.slane %v606_v37, 2  ;;  %v207_v40 = vrot.slane %v606_v37, 1  ;;  %205 = vst.msk [vmem:[#allocation2 + $0x1] sm:$0x1] %vm166_vm4, %v606_v37  ;;  %v222_v41 = vrot.slane %v606_v37, 4  ;;  %v225_v43 = vrot.slane %v606_v37, 5 }
 0x233   :  { %v217_v44 = vrot.slane %v606_v37, 3  ;;  %v235_v45 = vrot.slane %v606_v37, 7  ;;  %v230_v47 = vrot.slane %v606_v37, 6  ;;  %v319_v37 = vld [vmem:[#allocation3 + $0x268] sm:$0xff] }
 0x234   :  { %191 = vrot.lane.b32.xlu2 %v190_v38, %s645_s18  ;;  %213 = vrot.lane.b32.xlu1 %v212_v39, %s648_s12  ;;  %224 = vst.msk [vmem:[#allocation2 + $0x9] sm:$0x1] %vm166_vm4, %v222_v41  ;;  %v300_v38 = vld [vmem:[#allocation3 + $0x1d0] sm:$0xff]  ;;  %v301_v39 = vld [vmem:[#allocation3 + $0x1d8] sm:$0xff]  ;;  %v315_v41 = vld [vmem:[#allocation3 + $0x248] sm:$0xff] }
 0x235   :  { %208 = vrot.lane.b32.xlu0 %v207_v40, %s645_s18  ;;  %v314_v40 = vld [vmem:[#allocation3 + $0x240] sm:$0xff]  ;;  %456 = vmatpush.msrb.mxu3 %v319_v37  ;;  %v324_v37 = vld [vmem:[#allocation3 + $0x290] sm:$0xff] }
 0x236   :  { %465 = vmatpush.msra.mxu1 %v300_v38  ;;  %505 = vmatpush.msra.mxu2 %v301_v39  ;;  %v325_v38 = vld [vmem:[#allocation3 + $0x298] sm:$0xff]  ;;  %v320_v39 = vld [vmem:[#allocation3 + $0x270] sm:$0xff] }
 0x237   :  { %417 = vmatpush.msrb.mxu0 %v314_v40  ;;  %457 = vmatpush.msrb.mxu3 %v315_v41  ;;  %v321_v40 = vld [vmem:[#allocation3 + $0x278] sm:$0xff]  ;;  %v316_v41 = vld [vmem:[#allocation3 + $0x250] sm:$0xff] }
 0x23c   :  { %196 = vrot.lane.b32.xlu2 %v195_v42, %s648_s12  ;;  %226 = vrot.lane.b32.xlu1 %v225_v43, %s645_s18  ;;  %v296_v42 = vld [vmem:[#allocation3 + $0x1b0] sm:$0xff]  ;;  %v297_v43 = vld [vmem:[#allocation3 + $0x1b8] sm:$0xff] }
 0x23d   :  { %218 = vrot.lane.b32.xlu0 %v217_v44, %s647_s1  ;;  %v310_v44 = vld [vmem:[#allocation3 + $0x220] sm:$0xff]  ;;  %466 = vmatpush.msra.mxu1 %v296_v42  ;;  %v317_v42 = vld [vmem:[#allocation3 + $0x258] sm:$0xff] }
 0x23e   :  { %506 = vmatpush.msra.mxu2 %v297_v43  ;;  %418 = vmatpush.msrb.mxu0 %v310_v44  ;;  %v312_v43 = vld [vmem:[#allocation3 + $0x230] sm:$0xff]  ;;  %v313_v44 = vld [vmem:[#allocation3 + $0x238] sm:$0xff] }
 0x240   :  { %419 = vmatpush.msrb.mxu0 %v306_v49 }
 0x242   :  { %484 = vmatpush.msra.mxu0 %v368_v53 }
 0x244   :  { %236 = vrot.lane.b32.xlu2 %v235_v45, %s647_s1  ;;  %201 = vrot.lane.b32.xlu1 %v200_v46, %s647_s1  ;;  %v311_v45 = vld [vmem:[#allocation3 + $0x228] sm:$0xff]  ;;  %v292_v46 = vld [vmem:[#allocation3 + $0x190] sm:$0xff] }
 0x245   :  { %231 = vrot.lane.b32.xlu0 %v230_v47, %s648_s12  ;;  %v293_v47 = vld [vmem:[#allocation3 + $0x198] sm:$0xff]  ;;  %458 = vmatpush.msrb.mxu3 %v311_v45 }
 0x246   :  { %467 = vmatpush.msra.mxu1 %v292_v46  ;;  %507 = vmatpush.msra.mxu2 %v293_v47  ;;  %v308_v46 = vld [vmem:[#allocation3 + $0x210] sm:$0xff]  ;;  %v309_v47 = vld [vmem:[#allocation3 + $0x218] sm:$0xff] }
 0x247   :  { %459 = vmatpush.msrb.mxu3 %v307_v50  ;;  %485 = vmatpush.msra.mxu0 %v364_v57  ;;  %v371_v57 = vld [vmem:[#allocation3 + $0x400] ss:$8 sm:$0xf] }
 0x248   :  { %468 = vmatpush.msra.mxu1 %v288_v51  ;;  %508 = vmatpush.msra.mxu2 %v289_v52 }
 0x249   :  { %524 = vmatpush.msra.mxu3 %v369_v54  ;;  %486 = vmatpush.msra.mxu0 %v360_v61  ;;  %v377_v61 = vperm.slane %v371_v57, 1 }
 0x24a   :  { %469 = vmatpush.msra.mxu1 %v284_v55  ;;  %509 = vmatpush.msra.mxu2 %v285_v56 }
 0x24b   :  { %525 = vmatpush.msra.mxu3 %v365_v58  ;;  %487 = vmatpush.msra.mxu0 %v356_v2  ;;  %v376_v58 = vperm.slane %v371_v57, 0 }
 0x24c   :  { %470 = vmatpush.msra.mxu1 %v280_v59  ;;  %510 = vmatpush.msra.mxu2 %v281_v60 }
 0x24d   :  { %526 = vmatpush.msra.mxu3 %v361_v62  ;;  %488 = vmatpush.msra.mxu0 %v352_v6 }
 0x24e   :  { %471 = vmatpush.msra.mxu1 %v276_v63  ;;  %511 = vmatpush.msra.mxu2 %v277_v0  ;;  %v378_v63 = vperm.slane %v371_v57, 2 }
 0x24f   :  { %527 = vmatpush.msra.mxu3 %v357_v3  ;;  %489 = vmatpush.msra.mxu0 %v348_v10  ;;  %v373_v10 = vld [vmem:[#allocation3 + $0x401] ss:$8 sm:$0xf] }
 0x250   :  { %472 = vmatpush.msra.mxu1 %v272_v4  ;;  %512 = vmatpush.msra.mxu2 %v273_v5 }
 0x251   :  { %528 = vmatpush.msra.mxu3 %v353_v7  ;;  %490 = vmatpush.msra.mxu0 %v344_v14  ;;  %v379_v7 = vperm.slane %v371_v57, 3 }
 0x252   :  { %473 = vmatpush.msra.mxu1 %v268_v8  ;;  %513 = vmatpush.msra.mxu2 %v269_v9 }
 0x253   :  { %529 = vmatpush.msra.mxu3 %v349_v11  ;;  %491 = vmatpush.msra.mxu0 %v340_v19  ;;  %v550_v11 = vperm.slane %v373_v10, 1 }
 0x254   :  { %474 = vmatpush.msra.mxu1 %v264_v12  ;;  %514 = vmatpush.msra.mxu2 %v265_v13 }
 0x255   :  { %530 = vmatpush.msra.mxu3 %v345_v15  ;;  %492 = vmatpush.msra.mxu0 %v336_v23  ;;  %v549_v15 = vperm.slane %v373_v10, 0 }
 0x256   :  { %475 = vmatpush.msra.mxu1 %v260_v16  ;;  %515 = vmatpush.msra.mxu2 %v261_v17 }
 0x257   :  { %531 = vmatpush.msra.mxu3 %v341_v20  ;;  %493 = vmatpush.msra.mxu0 %v332_v27 }
 0x258   :  { %476 = vmatpush.msra.mxu1 %v256_v21  ;;  %516 = vmatpush.msra.mxu2 %v257_v22  ;;  %v552_v22 = vperm.slane %v373_v10, 3 }
 0x259   :  { %532 = vmatpush.msra.mxu3 %v337_v24  ;;  %494 = vmatpush.msra.mxu0 %v328_v31 }
 0x25a   :  { %477 = vmatpush.msra.mxu1 %v252_v25  ;;  %517 = vmatpush.msra.mxu2 %v253_v26 }
 0x25b   :  { %533 = vmatpush.msra.mxu3 %v333_v28  ;;  %495 = vmatpush.msra.mxu0 %v324_v37 }
 0x25c   :  { %478 = vmatpush.msra.mxu1 %v248_v29  ;;  %518 = vmatpush.msra.mxu2 %v249_v30  ;;  %v649_v29 = vmov 0   ;;  %v374_v30 = vld [vmem:[#allocation3 + $0x402] ss:$0 sm:$0xff] }
 0x25d   :  { %534 = vmatpush.msra.mxu3 %v329_v32  ;;  %496 = vmatpush.msra.mxu0 %v320_v39 }
 0x25e   :  { %479 = vmatpush.msra.mxu1 %v244_v33  ;;  %519 = vmatpush.msra.mxu2 %v245_v34 }
 0x25f   :  { %535 = vmatpush.msra.mxu3 %v325_v38  ;;  %497 = vmatpush.msra.mxu0 %v316_v41 }
 0x260   :  { %595 = vset.pattern.permute.xlu1 %v649_v29  ;;  %596 = vset.pattern.permute.xlu0 %v649_v29 }
 0x261   :  { %536 = vmatpush.msra.mxu3 %v321_v40  ;;  %498 = vmatpush.msra.mxu0 %v312_v43 }
 0x263   :  { %537 = vmatpush.msra.mxu3 %v317_v42  ;;  %499 = vmatpush.msra.mxu0 %v308_v46 }
 0x265   :  { %538 = vmatpush.msra.mxu3 %v313_v44 }
 0x267   :  { %539 = vmatpush.msra.mxu3 %v309_v47 }
 0x286   :  { %v719_v48 = vpop.permute.xlu2 %182 }
 0x28e   :  { %v192_v1 = vpop.permute.xlu2 %191 }
 0x28f   :  { %194 = vst.msk [vmem:[#allocation2 + $0x8] sm:$0x1] %vm173_vm5, %v192_v1 }
 0x296   :  { %v197_v18 = vpop.permute.xlu2 %196 }
 0x297   :  { %199 = vst.msk [vmem:[#allocation2 + $0x8] sm:$0x1] %vm179_vm6, %v197_v18  ;;  %v551_v18 = vperm.slane %v373_v10, 2 }
 0x29e   :  { %v177_v35 = vpop.permute.xlu1 %176  ;;  %v237_v54 = vpop.permute.xlu2 %236 }
 0x29f   :  { %v171_v36 = vpop.permute.xlu0 %170 }
 0x2a0   :  { %174 = vst.msk [vmem:[#allocation2] sm:$0x1] %vm173_vm5, %v171_v36 }
 0x2a1   :  { %180 = vst.msk [vmem:[#allocation2] sm:$0x1] %vm179_vm6, %v177_v35 }
 0x2a2   :  { %186 = vst.msk [vmem:[#allocation2] sm:$0x1] %vm185_vm7, %v719_v48 }
 0x2a6   :  { %v214_v45 = vpop.permute.xlu1 %213 }
 0x2a7   :  { %v209_v49 = vpop.permute.xlu0 %208 }
 0x2a8   :  { %211 = vst.msk [vmem:[#allocation2 + $0x1] sm:$0x1] %vm173_vm5, %v209_v49 }
 0x2a9   :  { %216 = vst.msk [vmem:[#allocation2 + $0x1] sm:$0x1] %vm179_vm6, %v214_v45 }
 0x2ae   :  { %v227_v48 = vpop.permute.xlu1 %226 }
 0x2af   :  { %229 = vst.msk [vmem:[#allocation2 + $0x9] sm:$0x1] %vm173_vm5, %v227_v48  ;;  %v219_v50 = vpop.permute.xlu0 %218 }
 0x2b0   :  { %221 = vst.msk [vmem:[#allocation2 + $0x1] sm:$0x1] %vm185_vm7, %v219_v50 }
 0x2b6   :  { %v202_v51 = vpop.permute.xlu1 %201 }
 0x2b7   :  { %204 = vst.msk [vmem:[#allocation2 + $0x8] sm:$0x1] %vm185_vm7, %v202_v51  ;;  %v232_v52 = vpop.permute.xlu0 %231  ;;  %v240_v53 = vld [vmem:[#allocation2] sm:$0xff] }
 0x2b8   :  { %234 = vst.msk [vmem:[#allocation2 + $0x9] sm:$0x1] %vm179_vm6, %v232_v52  ;;  %400 = vmatmul.f32.vlgmr.msrb.gmra.mxu1 %v240_v53  ;;  %440 = vmatmul.f32.vlgmr.msrb.gmra.mxu2 %v240_v53 }
 0x2b9   :  { %239 = vst.msk [vmem:[#allocation2 + $0x9] sm:$0x1] %vm185_vm7, %v237_v54 }
 0x2c0   :  { %480 = vmatmul.f32.vlgmr.msra.gmra.mxu1 %v240_v53  ;;  %520 = vmatmul.f32.vlgmr.msra.gmra.mxu2 %v240_v53  ;;  %v241_v55 = vld [vmem:[#allocation2 + $0x8] sm:$0xff] }
 0x2c1   :  { %420 = vmatmul.f32.vlgmr.msrb.gmra.mxu0 %v241_v55  ;;  %460 = vmatmul.f32.vlgmr.msrb.gmra.mxu3 %v241_v55 }
 0x2c9   :  { %500 = vmatmul.f32.vlgmr.msra.gmra.mxu0 %v241_v55  ;;  %540 = vmatmul.f32.vlgmr.msra.gmra.mxu3 %v241_v55 }
 0x335   :  { %v401_v56 = vpop.f32.mrf.mxu1 }
 0x336   :  { %v402_v62 = vadd.f32 %v401_v56, %v376_v58 }
 0x33b   :  { %v441_v59 = vpop.f32.mrf.mxu2 }
 0x33c   :  { %v442_v2 = vadd.f32 %v441_v59, %v377_v61 }
 0x33d   :  { %v481_v0 = vpop.f32.mrf.mxu1 }
 0x33e   :  { %v421_v60 = vpop.f32.mrf.mxu0  ;;  %v482_v4 = vadd.f32 %v481_v0, %v378_v63 }
 0x33f   :  { %v422_v1 = vadd.f32 %v421_v60, %v402_v62 }
 0x341   :  { %607 = vtanh.f32 %v422_v1 }
 0x343   :  { %v521_v9 = vpop.f32.mrf.mxu2 }
 0x344   :  { %v461_v3 = vpop.f32.mrf.mxu3  ;;  %v522_v12 = vadd.f32 %v521_v9, %v379_v7 }
 0x345   :  { %v462_v5 = vadd.f32 %v461_v3, %v442_v2 }
 0x346   :  { %v501_v6 = vpop.f32.mrf.mxu0 }
 0x347   :  { %609 = vtanh.f32 %v462_v5  ;;  %v502_v8 = vadd.f32 %v501_v6, %v482_v4  ;;  %v608_v13 = vpop.eup %607 }
 0x348   :  { %v557_v21 = vmul.f32 %v608_v13, %v549_v15 }
 0x349   :  { %611 = vtanh.f32 %v502_v8 }
 0x34c   :  { %v541_v14 = vpop.f32.mrf.mxu3 }
 0x34d   :  { %v610_v16 = vpop.eup %609  ;;  %v542_v17 = vadd.f32 %v541_v14, %v522_v12 }
 0x34e   :  { %v558_v19 = vmul.f32 %v610_v16, %v550_v11 }
 0x34f   :  { %v612_v20 = vpop.eup %611  ;;  %613 = vtanh.f32 %v542_v17 }
 0x350   :  { %v559_v23 = vmul.f32 %v612_v20, %v551_v18  ;;  %v561_v24 = vadd.f32 %v558_v19, %v557_v21 }
 0x352   :  { %v562_v27 = vadd.f32 %v561_v24, %v559_v23 }
 0x355   :  { %v614_v25 = vpop.eup %613 }
 0x356   :  { %v560_v26 = vmul.f32 %v614_v25, %v552_v22 }
 0x358   :  { %v563_v28 = vadd.f32 %v562_v27, %v560_v26 }
 0x35a   :  { %564 = vadd.xlane.f32.xlu0 %v563_v28 }
 0x3cd   :  { %v565_v31 = vpop.xlane.xlu0 %564 }
 0x3ce   :  { %v566_v32 = vadd.f32 %v565_v31, %v374_v30 }
 0x3d0   :  { %615 = vtanh.f32 %v566_v32 }
 0x3d6   :  { %v616_v33 = vpop.eup %615 }
 0x3d7   :  { %570 = vperm.xlu1 %595, %v616_v33  }
 0x449   :  { %v571_v34 = vpop.permute.xlu1 %570 }
 0x44a   :  { %573 = vst [vmem:[%s740_s3] sm:$0xff] %v571_v34 }
 0x44b   :  { %578 = vsyncpa [#allocation4], 1 }

</bundles_post_ra>
